<compile_context>
chip_gen: v7x
topology: tpu7x:2x2x1
jax: 0.10.0
libtpu: 0.0.40
codegen_flags: <defaults>
</compile_context>

<pallas_src>
import functools

import jax
import jax.numpy as jnp
from jax.experimental import pallas as pl
from jax.experimental.pallas import tpu as pltpu


def _rmsnorm_kernel(x_ref, w_ref, o_ref, *, eps, inv_dim, x_dtype):
    # x_ref: (TILE_ROWS, dim), w_ref: (1, dim), o_ref: (TILE_ROWS, dim)
    xf = x_ref[...].astype(jnp.float32)                          # x.float()
    ms = jnp.sum(xf * xf, axis=-1, keepdims=True) * inv_dim      # pow(2).mean(-1)
    normed = xf * jax.lax.rsqrt(ms + eps)                        # x * rsqrt(... + eps)
    if x_dtype != jnp.float32:
        # Reproduce PyTorch's `.type_as(x)` rounding before the f32 weight
        # multiply (result then promotes back to f32, matching torch).
        normed = normed.astype(x_dtype).astype(jnp.float32)
    w = w_ref[...].astype(jnp.float32)                           # loop-invariant (index_map (0,0))
    # Single downcast at the store (no-op when o_ref is f32).
    o_ref[...] = (normed * w).astype(o_ref.dtype)


def _pick_tile_rows(rows, dim, x_itemsize, o_itemsize):
    """Sublane-aligned row tile: big enough to hit the HBM roofline (>=512 rows
    where possible), small enough to leave a multi-step grid and fit a ~16 MiB
    double-buffered working set (safe on v5e/v6e/v7x)."""
    # sublane packing: 8 rows for 4-byte, 16 for 2-byte, 32 for 1-byte dtypes
    sublane = max(32 // x_itemsize, 32 // o_itemsize)
    # ~16 MiB budget for the double-buffered (x_tile + out_tile) pipeline
    # buffers; 512-1024 row tiles already reach 85-86% of the HBM roofline.
    budget = 16 * 1024 * 1024
    bytes_per_row = dim * (x_itemsize + o_itemsize)
    t = budget // (2 * max(bytes_per_row, 1))
    t = min(t, 1024)                      # >1024 rows buys <1-2% on any gen
    # Aim for >= ~8 grid steps (pipelining + both v7x TCs), but never shrink
    # a tile below 512 rows just to get more steps.
    target = max(512, -(-rows // 8))      # max(512, ceil(rows / 8))
    t = min(t, target)
    t = max(sublane, (t // sublane) * sublane)
    # No point in a tile larger than the sublane-rounded row count.
    rows_rounded = -(-rows // sublane) * sublane
    return min(t, rows_rounded)


def rmsnorm(x, weight, eps=1e-6, tile_rows=None):
    """x: (..., dim); weight: (dim,). RMSNorm over the last axis.

    Output dtype follows PyTorch promotion: promote_types(x.dtype, weight.dtype).
    """
    orig_shape = x.shape
    dim = orig_shape[-1]
    rows = 1
    for s in orig_shape[:-1]:
        rows *= s

    out_dtype = jnp.promote_types(x.dtype, weight.dtype)
    x_itemsize = jnp.dtype(x.dtype).itemsize
    o_itemsize = jnp.dtype(out_dtype).itemsize
    sublane = max(32 // x_itemsize, 32 // o_itemsize)

    x2d = x.reshape(rows, dim)
    w2d = weight.reshape(1, dim)

    if tile_rows is None:
        t = _pick_tile_rows(rows, dim, x_itemsize, o_itemsize)
    else:
        t = max(sublane, (tile_rows // sublane) * sublane)
        rows_rounded = -(-rows // sublane) * sublane
        t = min(t, rows_rounded)

    # No padding / slicing around the call: grid covers rows with a possibly
    # partial last block.  Pallas clips the boundary block's stores to the
    # array bounds, and rows are independent, so the garbage tail rows of the
    # last block never reach HBM.
    grid = (pl.cdiv(rows, t),)

    # Explicit scoped-VMEM limit: double-buffered (in + out) tiles + f32
    # in-kernel temporaries (xf / normed) + weight + headroom, capped at
    # 48 MiB so Mosaic scratch still fits on v7x's 64 MiB per-TC VMEM.
    w_bytes = dim * jnp.dtype(weight.dtype).itemsize
    pipeline_bytes = 2 * t * dim * (x_itemsize + o_itemsize)
    temp_bytes = 2 * t * dim * 4
    vmem_needed = pipeline_bytes + temp_bytes + 2 * w_bytes
    vmem_limit = int(min(max(vmem_needed + (2 << 20), 16 << 20), 48 << 20))

    # TODO(synk): for models with dim < 128 the output stores are lane-masked;
    # a rows-on-lanes layout (fold rows into the lane axis + segment reduce)
    # would be denser but is not needed for typical hidden sizes.
    out = pl.pallas_call(
        functools.partial(
            _rmsnorm_kernel, eps=eps, inv_dim=1.0 / float(dim), x_dtype=x.dtype
        ),
        out_shape=jax.ShapeDtypeStruct((rows, dim), out_dtype),
        grid_spec=pltpu.PrefetchScalarGridSpec(
            num_scalar_prefetch=0,
            grid=grid,
            in_specs=[
                pl.BlockSpec((t, dim), lambda i: (i, 0)),
                pl.BlockSpec((1, dim), lambda i: (0, 0)),
            ],
            out_specs=pl.BlockSpec((t, dim), lambda i: (i, 0)),
        ),
        compiler_params=pltpu.CompilerParams(
            dimension_semantics=("parallel",),   # shards the row grid across TCs on v7x
            vmem_limit_bytes=vmem_limit,
        ),
    )(x2d, w2d)

    return out.reshape(orig_shape[:-1] + (dim,))


def _reference(x, weight, eps):
    xf = x.astype(jnp.float32)
    normed = xf * jax.lax.rsqrt(jnp.mean(xf * xf, axis=-1, keepdims=True) + eps)
    if x.dtype != jnp.float32:
        normed = normed.astype(x.dtype).astype(jnp.float32)
    out_dtype = jnp.promote_types(x.dtype, weight.dtype)
    return (normed * weight.astype(jnp.float32)).astype(out_dtype)


if __name__ == "__main__":
    eps = 1e-6
    key = jax.random.PRNGKey(0)
    k0, k1, k2, k3, kw = jax.random.split(key, 5)

    # Primary test: shapes consistent with the module (batch=2, seq=8, hidden=32).
    batch, seq, hidden = 2, 8, 32
    x = jax.random.normal(k0, (batch, seq, hidden), dtype=jnp.float32)
    weight = jnp.ones((hidden,), dtype=jnp.float32)     # nn.Parameter(torch.ones(dim))

    out = jax.block_until_ready(rmsnorm(x, weight, eps=eps))
    ref = _reference(x, weight, eps)
    assert out.shape == x.shape and out.dtype == ref.dtype
    assert jnp.allclose(out, ref, atol=1e-5, rtol=1e-5)

    # Rows not divisible by the sublane-rounded tile (single partial block).
    x2 = jax.random.normal(k1, (3, 5, hidden), dtype=jnp.float32)
    out2 = jax.block_until_ready(rmsnorm(x2, weight, eps=eps))
    ref2 = _reference(x2, weight, eps)
    assert out2.shape == x2.shape
    assert jnp.allclose(out2, ref2, atol=1e-5, rtol=1e-5)

    # Multi-block grid with a partial boundary block (no pad / no slice path):
    # 300 rows, tile_rows=64 -> grid of 5, last block has 44 valid rows.
    dim3 = 256
    x3 = jax.random.normal(k2, (300, dim3), dtype=jnp.float32)
    w3 = 1.0 + 0.1 * jax.random.normal(kw, (dim3,), dtype=jnp.float32)
    out3 = jax.block_until_ready(rmsnorm(x3, w3, eps=eps, tile_rows=64))
    ref3 = _reference(x3, w3, eps)
    assert out3.shape == x3.shape
    assert jnp.allclose(out3, ref3, atol=1e-5, rtol=1e-5)

    # bf16 input: exercises the .type_as(x) rounding + promotion-to-f32 path.
    x4 = jax.random.normal(k3, (4, 8, dim3), dtype=jnp.bfloat16)
    out4 = jax.block_until_ready(rmsnorm(x4, w3, eps=eps))
    ref4 = _reference(x4, w3, eps)
    assert out4.shape == x4.shape and out4.dtype == ref4.dtype
    assert jnp.allclose(out4, ref4, atol=2e-2, rtol=2e-2)

    print("KERNEL_OK")
</pallas_src>

<mosaic_0001>
module attributes {stable_mosaic.version = 11 : i64} {
  func.func @_rmsnorm_kernel(%arg0: i32, %arg1: memref<16x32xf32, #tpu.memory_space<vmem>>, %arg2: memref<1x32xf32, #tpu.memory_space<vmem>>, %arg3: memref<16x32xf32, #tpu.memory_space<vmem>>) attributes {dimension_semantics = [#tpu.dimension_semantics<parallel>], iteration_bounds = array<i64: 1>, scalar_prefetch = 0 : i64, scratch_operands = 0 : i64, tpu.core_type = #tpu.core_type<tc>, window_params = [{transform_indices = @transform_0, window_bounds = array<i64: 16, 32>}, {pipeline_mode = #tpu.pipeline_mode<synchronous>, transform_indices = @transform_1, window_bounds = array<i64: 1, 32>}, {transform_indices = @transform_2, window_bounds = array<i64: 16, 32>}]} {
    %c0 = arith.constant 0 : index
    %c0_0 = arith.constant 0 : index
    %0 = vector.load %arg1[%c0, %c0_0] : memref<16x32xf32, #tpu.memory_space<vmem>>, vector<16x32xf32>
    %1 = arith.mulf %0, %0 : vector<16x32xf32>
    %cst = arith.constant dense<0.000000e+00> : vector<16xf32>
    %2 = vector.multi_reduction <add>, %1, %cst [1] : vector<16x32xf32> to vector<16xf32>
    %3 = vector.shape_cast %2 : vector<16xf32> to vector<16x1xf32>
    %cst_1 = arith.constant 3.125000e-02 : f32
    %4 = vector.broadcast %cst_1 : f32 to vector<16x1xf32>
    %5 = arith.mulf %3, %4 : vector<16x1xf32>
    %cst_2 = arith.constant 9.99999997E-7 : f32
    %6 = vector.broadcast %cst_2 : f32 to vector<16x1xf32>
    %7 = arith.addf %5, %6 : vector<16x1xf32>
    %8 = math.rsqrt %7 : vector<16x1xf32>
    %9 = vector.broadcast %8 : vector<16x1xf32> to vector<16x32xf32>
    %10 = arith.mulf %0, %9 : vector<16x32xf32>
    %c0_3 = arith.constant 0 : index
    %c0_4 = arith.constant 0 : index
    %11 = vector.load %arg2[%c0_3, %c0_4] : memref<1x32xf32, #tpu.memory_space<vmem>>, vector<1x32xf32>
    %12 = vector.broadcast %11 : vector<1x32xf32> to vector<16x32xf32>
    %13 = arith.mulf %10, %12 : vector<16x32xf32>
    %c0_5 = arith.constant 0 : index
    %c0_6 = arith.constant 0 : index
    %14 = vector.load %arg3[%c0_5, %c0_6] : memref<16x32xf32, #tpu.memory_space<vmem>>, vector<16x32xf32>
    tpu.vector_store %arg3[%c0_5, %c0_6], %13 {strides = array<i32>} : memref<16x32xf32, #tpu.memory_space<vmem>>, vector<16x32xf32>,
    return
  }
  func.func @transform_0(%arg0: i32) -> (i32, i32) {
    %c0_i32 = arith.constant 0 : i32
    %c0_i32_0 = arith.constant 0 : i32
    return %arg0, %c0_i32 : i32, i32
  }
  func.func @transform_1(%arg0: i32) -> (i32, i32) {
    %c0_i32 = arith.constant 0 : i32
    %c0_i32_0 = arith.constant 0 : i32
    %c0_i32_1 = arith.constant 0 : i32
    return %c0_i32, %c0_i32_0 : i32, i32
  }
  func.func @transform_2(%arg0: i32) -> (i32, i32) {
    %c0_i32 = arith.constant 0 : i32
    %c0_i32_0 = arith.constant 0 : i32
    return %arg0, %c0_i32 : i32, i32
  }
}

</mosaic_0001>

<bundles_post_ra>
// kernel: tpu_custom_call.1
= control target key start
LH: loop header
LB: loop body
LE: loop exit
PB: predicated region body
PF: predicated region fallthrough
CT: control target
= control target key end

     0   :  { %7 = vsyncpa [#allocation3], 0  ;;  %s186_s0 = inlined_call_operand.hbm [shape: f32[16,32], index: 0, kind: input, shape index: {}]   ;;  %s187_s1 = inlined_call_operand.vmem [shape: f32[1,32], index: 1, kind: input, shape index: {}]   ;;  %s188_s2 = inlined_call_operand.hbm [shape: f32[16,32], index: 2, kind: output, shape index: {}]  }
   0x1   :  { %8 = vsyncpa [#allocation4], 0  ;;  %s130_s9 = smov [#allocation2]   ;;  %s82_s13 = scalar_lea.hbm %s186_s0, 256 }
   0x2   :  { %s14_s10 = sshll.u32 %s130_s9, 4  ;;  %p83_p0 = scmp.ne.s32.totalorder %s186_s0, %s82_s13  ;;  %s15_s10 = int_to_ptr.vmem [resolvable:$true] %s14_s10 }
   0x3   :  { %p86_p1 = scmp.lt.u32.totalorder %s82_s13, %s186_s0 }
   0x5   :  { %p88_p2 = pnand %p86_p1, %p83_p0 }
   0x7   :  { %91 = shalt.err (!%p88_p2)
}
   0x8   :  { %s92_s18 = scalar_lea.vmem %s15_s10, 256  ;;  %p97_p4 = scmp.lt.s32.totalorder %s15_s10, %s15_s10 }
   0x9   :  { %p93_p3 = scmp.ne.s32.totalorder %s15_s10, %s92_s18  ;;  %p98_p5 = scmp.lt.s32.totalorder %s92_s18, %s92_s18 }
   0xb   :  { %p99_p6 = por %p98_p5, %p97_p4 }
   0xd   :  { %p100_p7 = pnand %p99_p6, %p93_p3 }
   0xf   :  { %103 = shalt.err (!%p100_p7)
}
  0x10   :  { %s131_s19 = smov 128   ;;  %s132_s20 = smov 8  }
  0x11   :  { %20 = dma.hbm_to_vmem [thread:$0]  %s186_s0, 256, %s15_s10, [#allocation3], %s131_s19, %s131_s19, %s132_s20  }
  0x12   :  { %126 = dma.done.wait [#allocation3], 256  }
  0x13   :  { %127 = vsyncadd [#allocation3], 4294967040  ;;  %v26_v0 = vld [vmem:[#allocation2] sm:$0xff]  ;;  %vm30_vm0 = vcmask 261120   ;;  %v27_v1 = vld [vmem:[#allocation2 + $0x8] sm:$0xff]  ;;  %s133_s24 = smov [#allocation5]  }
  0x14   :  { %v28_v2 = vmul.f32 %v26_v0, %v26_v0  ;;  %v29_v3 = vmul.f32 %v27_v1, %v27_v1  ;;  %v73_v13 = vld [vmem:[%s187_s1] ss:$0 sm:$0xff]  ;;  %s61_s25 = sshll.u32 %s133_s24, 4  ;;  %s62_s25 = int_to_ptr.vmem [resolvable:$true] %s61_s25 }
  0x15   :  { %s104_s26 = scalar_lea.vmem %s62_s25, 256  ;;  %p109_p9 = scmp.lt.s32.totalorder %s62_s25, %s62_s25 }
  0x16   :  { %v31_v4 = vsel %vm30_vm0, %v28_v2, 0.0  ;;  %v34_v5 = vsel %vm30_vm0, %v29_v3, 0.0  ;;  %p105_p8 = scmp.ne.s32.totalorder %s62_s25, %s104_s26  ;;  %p110_p10 = scmp.lt.s32.totalorder %s104_s26, %s104_s26 }
  0x17   :  { %32 = vadd.xlane.f32.xlu0 %v31_v4 }
  0x18   :  { %p111_p11 = por %p110_p10, %p109_p9 }
  0x1a   :  { %p112_p12 = pnand %p111_p11, %p105_p8 }
  0x1b   :  { %35 = vadd.xlane.f32.xlu0 %v34_v5 }
  0xa4   :  { %v33_v6 = vpop.xlane.xlu0 %32 }
  0xa5   :  { %v37_v7 = vmul.f32 0.03125, %v33_v6 }
  0xa7   :  { %v39_v8 = vadd.f32 1e-06, %v37_v7 }
  0xa8   :  { %v36_v9 = vpop.xlane.xlu0 %35 }
  0xa9   :  { %78 = vrsqrt.f32 %v39_v8  ;;  %v38_v10 = vmul.f32 0.03125, %v36_v9 }
  0xab   :  { %v40_v11 = vadd.f32 1e-06, %v38_v10 }
  0xad   :  { %80 = vrsqrt.f32 %v40_v11 }
  0xb3   :  { %v79_v12 = vpop.eup %78 }
  0xb4   :  { %v43_v14 = vmul.f32 %v79_v12, %v26_v0 }
  0xb6   :  { %v52_v15 = vmul.f32 %v73_v13, %v43_v14 }
  0xb7   :  { %v81_v16 = vpop.eup %80 }
  0xb8   :  { %v44_v17 = vmul.f32 %v81_v16, %v27_v1  ;;  %54 = vst.msk [vmem:[#allocation5] sm:$0xff] %vm30_vm0, %v52_v15 }
  0xba   :  { %v53_v18 = vmul.f32 %v73_v13, %v44_v17 }
  0xbc   :  { %55 = vst.msk [vmem:[#allocation5 + $0x8] sm:$0xff] %vm30_vm0, %v53_v18 }
  0xbd   :  { %115 = shalt.err (!%p112_p12)
}
  0xbe   :  { %s116_s28 = scalar_lea.hbm %s188_s2, 256 }
  0xbf   :  { %p117_p13 = scmp.ne.s32.totalorder %s188_s2, %s116_s28  ;;  %p120_p0 = scmp.lt.u32.totalorder %s116_s28, %s188_s2 }
  0xc1   :  { %p122_p1 = pnand %p120_p0, %p117_p13 }
  0xc3   :  { %125 = shalt.err (!%p122_p1)
}
  0xc4   :  { %67 = dma.vmem_to_hbm [thread:$0]  %s62_s25, 256, %s188_s2, [#allocation4], %s131_s19, %s131_s19, %s132_s20  }
  0xc5   :  { %128 = dma.done.wait [#allocation4], 256  }
  0xc6   :  { %129 = vsyncadd [#allocation4], 4294967040 }
  0xc7   :  { %71 = vsyncpa [#allocation3], 1 }
  0xc8   :  { %72 = vsyncpa [#allocation4], 1 }

</bundles_post_ra>
